<compile_context>
chip_gen: v7x
topology: tpu7x:2x2x1
jax: 0.10.0
libtpu: 0.0.40
codegen_flags: <defaults>
</compile_context>

<pallas_src>
import math

import jax
import jax.numpy as jnp
from jax.experimental import pallas as pl
from jax.experimental.pallas import tpu as pltpu

_LANES = 128      # vreg lane width
_SUBLANES = 8     # vreg sublane width


def _reparam_kernel(mu_ref, log_sigma_ref, eps_ref, z_ref):
    # All refs are (TB, 128) VMEM tiles. Compute in f32, store in output dtype.
    std = jnp.exp(0.5 * log_sigma_ref[...].astype(jnp.float32))   # EUP exp
    z = mu_ref[...].astype(jnp.float32) + eps_ref[...].astype(jnp.float32) * std
    z_ref[...] = z.astype(z_ref.dtype)


def _pad_to_slab(x, rows_padded):
    """Flatten x and zero-pad into a lane-dense (rows_padded, 128) slab."""
    flat = x.reshape(-1)
    pad = rows_padded * _LANES - flat.shape[0]
    if pad:
        flat = jnp.pad(flat, (0, pad))
    return flat.reshape(rows_padded, _LANES)


def reparametrization_trick(mu, log_sigma, key, *, block_rows=2048):
    """z = mu + eps * exp(0.5 * log_sigma), eps ~ N(0, I)."""
    assert mu.shape == log_sigma.shape
    orig_shape = mu.shape
    out_dtype = mu.dtype
    n = math.prod(orig_shape)

    # Noise drawn once in the wrapper (same dtype as mu -> same HBM bytes).
    eps = jax.random.normal(key, orig_shape, dtype=mu.dtype)

    # ----- lane-dense layout: flatten to (rows, 128), pad as needed ---------
    rows = pl.cdiv(n, _LANES)
    # Tile rows: multiple of 8 sublanes, capped at block_rows.
    tb = min(block_rows, ((rows + _SUBLANES - 1) // _SUBLANES) * _SUBLANES)
    tb = ((tb + _SUBLANES - 1) // _SUBLANES) * _SUBLANES
    rows_padded = pl.cdiv(rows, tb) * tb

    mu_s = _pad_to_slab(mu, rows_padded)
    ls_s = _pad_to_slab(log_sigma, rows_padded)
    eps_s = _pad_to_slab(eps, rows_padded)

    spec = pl.BlockSpec((tb, _LANES), lambda i: (i, 0))

    z_slab = pl.pallas_call(
        _reparam_kernel,
        out_shape=jax.ShapeDtypeStruct((rows_padded, _LANES), out_dtype),
        grid=(rows_padded // tb,),
        in_specs=[spec, spec, spec],
        out_specs=spec,
        compiler_params=pltpu.CompilerParams(
            dimension_semantics=("parallel",),       # shard row-tiles across TCs (v7x)
            vmem_limit_bytes=32 * 1024 * 1024,       # headroom on all generations
        ),
    )(mu_s, ls_s, eps_s)

    # Drop padding and restore the original (B, D) layout.
    return z_slab.reshape(-1)[:n].reshape(orig_shape)


if __name__ == "__main__":
    key = jax.random.PRNGKey(0)
    k_mu, k_ls, k_eps = jax.random.split(key, 3)

    batch, latent_dim = 2, 32
    mu = jax.random.normal(k_mu, (batch, latent_dim), dtype=jnp.float32)
    log_sigma = jax.random.normal(k_ls, (batch, latent_dim), dtype=jnp.float32)

    z = reparametrization_trick(mu, log_sigma, k_eps)
    z = jax.block_until_ready(z)

    assert z.shape == mu.shape and z.dtype == mu.dtype
    assert bool(jnp.all(jnp.isfinite(z)))

    # Statistical sanity check: (z - mu) / exp(0.5*log_sigma) should be ~N(0,1).
    eps_rec = (z - mu) / jnp.exp(0.5 * log_sigma)
    assert bool(jnp.all(jnp.abs(eps_rec) < 8.0))
    assert bool(jnp.std(eps_rec) > 0.1)  # noise is actually present

    print("KERNEL_OK")
</pallas_src>

<mosaic_0001>
module attributes {stable_mosaic.version = 11 : i64} {
  func.func @_reparam_kernel(%arg0: i32, %arg1: memref<8x128xf32, #tpu.memory_space<vmem>>, %arg2: memref<8x128xf32, #tpu.memory_space<vmem>>, %arg3: memref<8x128xf32, #tpu.memory_space<vmem>>, %arg4: memref<8x128xf32, #tpu.memory_space<vmem>>) attributes {dimension_semantics = [#tpu.dimension_semantics<parallel>], iteration_bounds = array<i64: 1>, scalar_prefetch = 0 : i64, scratch_operands = 0 : i64, tpu.core_type = #tpu.core_type<tc>, window_params = [{transform_indices = @transform_0, window_bounds = array<i64: 8, 128>}, {transform_indices = @transform_1, window_bounds = array<i64: 8, 128>}, {transform_indices = @transform_2, window_bounds = array<i64: 8, 128>}, {transform_indices = @transform_3, window_bounds = array<i64: 8, 128>}]} {
    %c0 = arith.constant 0 : index
    %c0_0 = arith.constant 0 : index
    %0 = vector.load %arg2[%c0, %c0_0] : memref<8x128xf32, #tpu.memory_space<vmem>>, vector<8x128xf32>
    %cst = arith.constant 5.000000e-01 : f32
    %1 = vector.broadcast %cst : f32 to vector<8x128xf32>
    %2 = arith.mulf %1, %0 : vector<8x128xf32>
    %3 = math.exp %2 : vector<8x128xf32>
    %c0_1 = arith.constant 0 : index
    %c0_2 = arith.constant 0 : index
    %4 = vector.load %arg1[%c0_1, %c0_2] : memref<8x128xf32, #tpu.memory_space<vmem>>, vector<8x128xf32>
    %c0_3 = arith.constant 0 : index
    %c0_4 = arith.constant 0 : index
    %5 = vector.load %arg3[%c0_3, %c0_4] : memref<8x128xf32, #tpu.memory_space<vmem>>, vector<8x128xf32>
    %6 = arith.mulf %5, %3 : vector<8x128xf32>
    %7 = arith.addf %4, %6 : vector<8x128xf32>
    %c0_5 = arith.constant 0 : index
    %c0_6 = arith.constant 0 : index
    %8 = vector.load %arg4[%c0_5, %c0_6] : memref<8x128xf32, #tpu.memory_space<vmem>>, vector<8x128xf32>
    tpu.vector_store %arg4[%c0_5, %c0_6], %7 {strides = array<i32>} : memref<8x128xf32, #tpu.memory_space<vmem>>, vector<8x128xf32>,
    return
  }
  func.func @transform_0(%arg0: i32) -> (i32, i32) {
    %c0_i32 = arith.constant 0 : i32
    %c0_i32_0 = arith.constant 0 : i32
    return %arg0, %c0_i32 : i32, i32
  }
  func.func @transform_1(%arg0: i32) -> (i32, i32) {
    %c0_i32 = arith.constant 0 : i32
    %c0_i32_0 = arith.constant 0 : i32
    return %arg0, %c0_i32 : i32, i32
  }
  func.func @transform_2(%arg0: i32) -> (i32, i32) {
    %c0_i32 = arith.constant 0 : i32
    %c0_i32_0 = arith.constant 0 : i32
    return %arg0, %c0_i32 : i32, i32
  }
  func.func @transform_3(%arg0: i32) -> (i32, i32) {
    %c0_i32 = arith.constant 0 : i32
    %c0_i32_0 = arith.constant 0 : i32
    return %arg0, %c0_i32 : i32, i32
  }
}

</mosaic_0001>

<bundles_post_ra>
// kernel: tpu_custom_call.1
= control target key start
LH: loop header
LB: loop body
LE: loop exit
PB: predicated region body
PF: predicated region fallthrough
CT: control target
= control target key end

     0   :  { %8 = vsyncpa [#allocation3], 0  ;;  %s247_s0 = inlined_call_operand.hbm [shape: f32[8,128], index: 0, kind: input, shape index: {}]   ;;  %s248_s1 = inlined_call_operand.hbm [shape: f32[8,128], index: 1, kind: input, shape index: {}]   ;;  %s249_s2 = inlined_call_operand.hbm [shape: f32[8,128], index: 2, kind: input, shape index: {}]   ;;  %s250_s3 = inlined_call_operand.hbm [shape: f32[8,128], index: 3, kind: output, shape index: {}]  }
   0x1   :  { %9 = vsyncpa [#allocation6], 0 }
   0x2   :  { %10 = vsyncpa [#allocation4], 0  ;;  %s175_s12 = smov [#allocation5]   ;;  %s176_s14 = smov [#allocation2]  }
   0x3   :  { %s27_s13 = sshll.u32 %s175_s12, 4  ;;  %s17_s15 = sshll.u32 %s176_s14, 4  ;;  %s28_s13 = int_to_ptr.vmem [resolvable:$true] %s27_s13  ;;  %s18_s15 = int_to_ptr.vmem [resolvable:$true] %s17_s15 }
   0x4   :  { %s81_s18 = scalar_lea.hbm %s248_s1, 128 }
   0x5   :  { %p82_p0 = scmp.ne.s32.totalorder %s248_s1, %s81_s18  ;;  %p85_p1 = scmp.lt.u32.totalorder %s81_s18, %s248_s1 }
   0x7   :  { %p87_p2 = pnand %p85_p1, %p82_p0 }
   0x9   :  { %90 = shalt.err (!%p87_p2)
}
   0xa   :  { %s91_s23 = scalar_lea.vmem %s28_s13, 128  ;;  %p96_p4 = scmp.lt.s32.totalorder %s28_s13, %s28_s13 }
   0xb   :  { %p92_p3 = scmp.ne.s32.totalorder %s28_s13, %s91_s23  ;;  %p97_p5 = scmp.lt.s32.totalorder %s91_s23, %s91_s23 }
   0xd   :  { %p98_p6 = por %p97_p5, %p96_p4 }
   0xf   :  { %p99_p7 = pnand %p98_p6, %p92_p3 }
  0x11   :  { %102 = shalt.err (!%p99_p7)
}
  0x12   :  { %30 = dma.hbm_to_vmem [thread:$0]  %s248_s1, 128, %s28_s13, [#allocation6]  }
  0x13   :  { %s103_s28 = scalar_lea.hbm %s247_s0, 128 }
  0x14   :  { %p104_p8 = scmp.ne.s32.totalorder %s247_s0, %s103_s28  ;;  %p107_p9 = scmp.lt.u32.totalorder %s103_s28, %s247_s0 }
  0x16   :  { %p109_p10 = pnand %p107_p9, %p104_p8 }
  0x18   :  { %112 = shalt.err (!%p109_p10)
}
  0x19   :  { %s113_s6 = scalar_lea.vmem %s18_s15, 128  ;;  %p118_p12 = scmp.lt.s32.totalorder %s18_s15, %s18_s15 }
  0x1a   :  { %p114_p11 = scmp.ne.s32.totalorder %s18_s15, %s113_s6  ;;  %p119_p13 = scmp.lt.s32.totalorder %s113_s6, %s113_s6 }
  0x1c   :  { %p120_p0 = por %p119_p13, %p118_p12 }
  0x1e   :  { %p121_p1 = pnand %p120_p0, %p114_p11 }
  0x20   :  { %124 = shalt.err (!%p121_p1)
}
  0x21   :  { %20 = dma.hbm_to_vmem [thread:$0]  %s247_s0, 128, %s18_s15, [#allocation3]  }
  0x22   :  { %s177_s8 = smov [#allocation7]   ;;  %s125_s12 = scalar_lea.hbm %s249_s2, 128 }
  0x23   :  { %s37_s9 = sshll.u32 %s177_s8, 4  ;;  %p126_p2 = scmp.ne.s32.totalorder %s249_s2, %s125_s12  ;;  %s38_s9 = int_to_ptr.vmem [resolvable:$true] %s37_s9 }
  0x24   :  { %p129_p3 = scmp.lt.u32.totalorder %s125_s12, %s249_s2 }
  0x26   :  { %p131_p4 = pnand %p129_p3, %p126_p2 }
  0x28   :  { %134 = shalt.err (!%p131_p4)
}
  0x29   :  { %s135_s18 = scalar_lea.vmem %s38_s9, 128  ;;  %p140_p6 = scmp.lt.s32.totalorder %s38_s9, %s38_s9 }
  0x2a   :  { %p136_p5 = scmp.ne.s32.totalorder %s38_s9, %s135_s18  ;;  %p141_p7 = scmp.lt.s32.totalorder %s135_s18, %s135_s18 }
  0x2c   :  { %p142_p8 = por %p141_p7, %p140_p6 }
  0x2e   :  { %p143_p9 = pnand %p142_p8, %p136_p5 }
  0x30   :  { %146 = shalt.err (!%p143_p9)
}
  0x31   :  { %40 = dma.hbm_to_vmem [thread:$0]  %s249_s2, 128, %s38_s9, [#allocation6]  }
  0x32   :  { %169 = dma.done.wait [#allocation3], 128  }
  0x33   :  { %170 = vsyncadd [#allocation3], 4294967168 }
  0x34   :  { %171 = dma.done.wait [#allocation6], 256  }
  0x35   :  { %172 = vsyncadd [#allocation6], 4294967040  ;;  %v50_v0 = vld [vmem:[#allocation5] sm:$0xff]  ;;  %v55_v3 = vld [vmem:[#allocation7] sm:$0xff]  ;;  %s178_s19 = smov [#allocation8]  }
  0x36   :  { %v51_v1 = vmul.f32 0.5, %v50_v0  ;;  %v54_v5 = vld [vmem:[#allocation2] sm:$0xff]  ;;  %s65_s20 = sshll.u32 %s178_s19, 4  ;;  %s66_s20 = int_to_ptr.vmem [resolvable:$true] %s65_s20 }
  0x37   :  { %s147_s21 = scalar_lea.vmem %s66_s20, 128  ;;  %p152_p11 = scmp.lt.s32.totalorder %s66_s20, %s66_s20 }
  0x38   :  { %v52_v2 = vmul.f32 1.442695, %v51_v1  ;;  %p148_p10 = scmp.ne.s32.totalorder %s66_s20, %s147_s21  ;;  %p153_p12 = scmp.lt.s32.totalorder %s147_s21, %s147_s21 }
  0x3a   :  { %79 = vpow2.f32 %v52_v2  ;;  %p154_p13 = por %p153_p12, %p152_p11 }
  0x3c   :  { %p155_p0 = pnand %p154_p13, %p148_p10 }
  0x44   :  { %v80_v4 = vpop.eup %79 }
  0x45   :  { %v56_v6 = vmul.f32 %v80_v4, %v55_v3 }
  0x47   :  { %v57_v7 = vadd.f32 %v56_v6, %v54_v5 }
  0x49   :  { %58 = vst [vmem:[#allocation8] sm:$0xff] %v57_v7 }
  0x4a   :  { %158 = shalt.err (!%p155_p0)
}
  0x4b   :  { %s159_s23 = scalar_lea.hbm %s250_s3, 128 }
  0x4c   :  { %p160_p1 = scmp.ne.s32.totalorder %s250_s3, %s159_s23  ;;  %p163_p2 = scmp.lt.u32.totalorder %s159_s23, %s250_s3 }
  0x4e   :  { %p165_p3 = pnand %p163_p2, %p160_p1 }
  0x50   :  { %168 = shalt.err (!%p165_p3)
}
  0x51   :  { %68 = dma.vmem_to_hbm [thread:$0]  %s66_s20, 128, %s250_s3, [#allocation4]  }
  0x52   :  { %173 = dma.done.wait [#allocation4], 128  }
  0x53   :  { %174 = vsyncadd [#allocation4], 4294967168 }
  0x54   :  { %72 = vsyncpa [#allocation3], 1 }
  0x55   :  { %73 = vsyncpa [#allocation6], 1 }
  0x56   :  { %74 = vsyncpa [#allocation4], 1 }

</bundles_post_ra>
